<compile_context>
chip_gen: v5e
topology: v5e:2x2
jax: 0.10.0
libtpu: 0.0.40
codegen_flags: <defaults>
</compile_context>

<pallas_src>
import math

import jax
import jax.numpy as jnp
from jax.experimental import pallas as pl
from jax.experimental.pallas import tpu as pltpu


def _round_up(x, m):
    return ((x + m - 1) // m) * m


# ---------------------------------------------------------------------------
# Kernel: operates entirely on 4-row-packed, 128-lane-dense tiles.
# ---------------------------------------------------------------------------
def low_dim_generate_kernel(semp_ref, orgp_ref,
                            a_blk_ref, b_blk_ref, c_row_ref,
                            w1_blk_ref, w2_blk_ref, ln_blk_ref,
                            out_ref):
    f32 = jnp.float32
    dot = lambda a, b: jnp.dot(a, b, preferred_element_type=f32)

    # Folded affine pre-FFN chain (block-diagonal over the 4-row lane packing):
    #   ft_position[row] = sem[row] @ A_sem + org[row] @ B_org + c
    ft = (dot(semp_ref[...], a_blk_ref[...])
          + dot(orgp_ref[...], b_blk_ref[...])
          + c_row_ref[...])

    # PoswiseFeedForwardNet (Linear -> ReLU -> Linear, no bias) + residual.
    hid = jnp.maximum(dot(ft, w1_blk_ref[...]), 0.0)
    y = dot(hid, w2_blk_ref[...]) + ft

    # LayerNorm(output_dim), weight=1, bias=0, eps=1e-5.
    # Per-32-lane-segment mean / variance via a block-diagonal averaging matrix
    # (keeps everything lane-dense; no masked lane reductions, no relayouts).
    mu = dot(y, ln_blk_ref[...])          # segment mean, broadcast within segment
    d = y - mu
    var = dot(d * d, ln_blk_ref[...])     # segment mean of squared deviations
    out_ref[...] = d * jax.lax.rsqrt(var + 1e-5)


# ---------------------------------------------------------------------------
# Wrapper: packed-row grid over the batch.
# ---------------------------------------------------------------------------
def low_dim_generate(sem, origin_embedding, packed, *, pack, rows_per_block=2048):
    batch, hidden_dim = sem.shape
    input_dim = origin_embedding.shape[1]
    out_lanes = packed["a_blk"].shape[1]          # pack * output_dim (lane-dense)
    output_dim = out_lanes // pack

    # Pad the batch to a multiple of `pack` only when strictly needed (rare):
    # tail rows are zeros, consumed row-wise only, and sliced off at the end.
    b_pad = _round_up(batch, pack)
    if b_pad != batch:
        sem = jnp.pad(sem, ((0, b_pad - batch), (0, 0)))
        origin_embedding = jnp.pad(origin_embedding, ((0, b_pad - batch), (0, 0)))

    rows_p = b_pad // pack
    # FREE contiguous reshapes: `pack` original rows per lane-dense packed row.
    semp = sem.reshape(rows_p, pack * hidden_dim)                 # (rows_p, 128)
    orgp = origin_embedding.reshape(rows_p, pack * input_dim)     # (rows_p, 256)

    # Packed-row tile size: this kernel is per-grid-step-overhead / DMA bound,
    # so use large tiles (default ~2048 original rows = 512 packed rows,
    # ~3 MiB double-buffered -> fits v5e's 16 MiB default scoped VMEM).  Keep
    # >=2 blocks when possible so the "parallel" axis feeds both v7x TCs.
    tp_cap = max(8, (rows_per_block // pack) // 8 * 8)
    if rows_p < 16:
        tp = rows_p                                   # single full block
    else:
        tp = min(tp_cap, _round_up(pl.cdiv(rows_p, 2), 8))
    grid = pl.cdiv(rows_p, tp)    # trailing partial block masked by Pallas

    def row_spec(lanes):
        return pl.BlockSpec((tp, lanes), lambda i: (i, 0))

    def resident_spec(arr):
        # Same block index every grid step -> stays resident in VMEM.
        return pl.BlockSpec(arr.shape, lambda i: (0, 0))

    out = pl.pallas_call(
        low_dim_generate_kernel,
        out_shape=jax.ShapeDtypeStruct((rows_p, out_lanes), jnp.float32),
        grid_spec=pltpu.PrefetchScalarGridSpec(
            num_scalar_prefetch=0,
            grid=(grid,),
            in_specs=[
                row_spec(pack * hidden_dim),      # packed sem
                row_spec(pack * input_dim),       # packed origin_embedding
                resident_spec(packed["a_blk"]),   # block-diag folded sem weight
                resident_spec(packed["b_blk"]),   # block-diag folded org weight
                resident_spec(packed["c_row"]),   # lane-tiled folded bias
                resident_spec(packed["w1_blk"]),  # block-diag FFN fc1
                resident_spec(packed["w2_blk"]),  # block-diag FFN fc2
                resident_spec(packed["ln_blk"]),  # block-diag segment-mean matrix
            ],
            out_specs=row_spec(out_lanes),
        ),
        compiler_params=pltpu.CompilerParams(
            dimension_semantics=("parallel",),    # v7x: shard batch tiles over 2 TCs
        ),
    )(semp, orgp, packed["a_blk"], packed["b_blk"], packed["c_row"],
      packed["w1_blk"], packed["w2_blk"], packed["ln_blk"])

    # Free contiguous reshape back to (batch, output_dim); slice is a no-op in
    # the common batch % pack == 0 case.
    return out.reshape(b_pad, output_dim)[:batch]


# ---------------------------------------------------------------------------
# Parameter init (PyTorch-style), affine folding, and TPU packing (all at init)
# ---------------------------------------------------------------------------
def init_params(key, hidden_dim, input_dim, output_dim, d_ff=1):
    """PyTorch-style uniform(+-1/sqrt(fan_in)) init; weights stored as
    (in_features, out_features) so y = x @ W + b."""
    def linear(k, fan_in, fan_out, bias=True):
        kw, kb = jax.random.split(k)
        bound = 1.0 / jnp.sqrt(jnp.float32(fan_in))
        w = jax.random.uniform(kw, (fan_in, fan_out), jnp.float32, -bound, bound)
        b = (jax.random.uniform(kb, (1, fan_out), jnp.float32, -bound, bound)
             if bias else None)
        return w, b

    keys = jax.random.split(key, 7)
    bp1_w, bp1_b = linear(keys[0], input_dim, input_dim // 4)
    bp2_w, bp2_b = linear(keys[1], input_dim // 4, output_dim)
    ft1_w, ft1_b = linear(keys[2], hidden_dim + output_dim, output_dim // 2)
    ft2_w, ft2_b = linear(keys[3], hidden_dim + output_dim, output_dim // 2)
    ftall_w, ftall_b = linear(keys[4], hidden_dim + output_dim, output_dim)
    ffn1_w, _ = linear(keys[5], output_dim, d_ff * output_dim, bias=False)
    ffn2_w, _ = linear(keys[6], d_ff * output_dim, output_dim, bias=False)

    # cat(FT1(x), FT2(x)) == x @ [W1 | W2] + [b1 | b2]
    ft12_w = jnp.concatenate([ft1_w, ft2_w], axis=1)
    ft12_b = jnp.concatenate([ft1_b, ft2_b], axis=1)

    return dict(
        bp1_w=bp1_w, bp1_b=bp1_b, bp2_w=bp2_w, bp2_b=bp2_b,
        ft12_ws=ft12_w[:hidden_dim], ft12_wb=ft12_w[hidden_dim:], ft12_b=ft12_b,
        ftall_ws=ftall_w[:hidden_dim], ftall_wb=ftall_w[hidden_dim:],
        ftall_b=ftall_b,
        ffn1_w=ffn1_w, ffn2_w=ffn2_w,
    )


def fold_affine(p, output_dim):
    """Collapse the all-affine pre-FFN chain into (A_sem, B_org, c) so that
    ft_position = sem @ A_sem + org @ B_org + c  (done once, in f32, at init)."""
    eye = jnp.eye(output_dim, dtype=jnp.float32)
    bp_w = p["bp1_w"] @ p["bp2_w"]
    bp_c = p["bp1_b"] @ p["bp2_w"] + p["bp2_b"]
    m1 = eye + p["ft12_wb"]
    m2 = eye + p["ftall_wb"]
    a_sem = p["ft12_ws"] @ m2 + p["ftall_ws"]
    b_org = bp_w @ m1 @ m2
    c = bp_c @ m1 @ m2 + p["ft12_b"] @ m2 + p["ftall_b"]
    return a_sem, b_org, c, p["ffn1_w"], p["ffn2_w"]


def pack_for_tpu(folded, output_dim, pack):
    """Block-diagonal (kron(I_pack, W)) weights so the kernel can process `pack`
    original rows per 128-lane packed row with plain MXU matmuls."""
    a_sem, b_org, c, w1, w2 = folded
    eye_p = jnp.eye(pack, dtype=jnp.float32)
    return dict(
        a_blk=jnp.kron(eye_p, a_sem),                      # (pack*hidden, pack*out)
        b_blk=jnp.kron(eye_p, b_org),                      # (pack*input,  pack*out)
        c_row=jnp.tile(c, (1, pack)),                      # (1, pack*out)
        w1_blk=jnp.kron(eye_p, w1),                        # (pack*out, pack*dff*out)
        w2_blk=jnp.kron(eye_p, w2),                        # (pack*dff*out, pack*out)
        ln_blk=jnp.kron(eye_p, jnp.full((output_dim, output_dim),
                                        1.0 / output_dim, jnp.float32)),
    )


# ---------------------------------------------------------------------------
# Pure-JAX reference of the ORIGINAL (unfolded) PyTorch forward
# ---------------------------------------------------------------------------
def reference(sem, origin, p):
    hi = jax.lax.Precision.HIGHEST
    bp = jnp.dot(jnp.dot(origin, p["bp1_w"], precision=hi) + p["bp1_b"],
                 p["bp2_w"], precision=hi) + p["bp2_b"]
    ft = (jnp.dot(sem, p["ft12_ws"], precision=hi)
          + jnp.dot(bp, p["ft12_wb"], precision=hi) + p["ft12_b"])
    ft_pos = bp + ft
    ftall = (jnp.dot(sem, p["ftall_ws"], precision=hi)
             + jnp.dot(ft_pos, p["ftall_wb"], precision=hi) + p["ftall_b"])
    ft_pos = ft_pos + ftall
    ffn = jnp.dot(jnp.maximum(jnp.dot(ft_pos, p["ffn1_w"], precision=hi), 0.0),
                  p["ffn2_w"], precision=hi)
    y = ffn + ft_pos
    mean = jnp.mean(y, axis=-1, keepdims=True)
    var = jnp.mean(jnp.square(y - mean), axis=-1, keepdims=True)
    return (y - mean) / jnp.sqrt(var + 1e-5)


if __name__ == "__main__":
    hidden_dim, input_dim, output_dim, d_ff = 32, 64, 32, 1
    batch = 200   # multiple of the 4-row packing, NOT of the tile -> exercises
                  # the no-pad path, a 2-block grid and a masked partial block.

    key = jax.random.PRNGKey(0)
    k_sem, k_org, k_params = jax.random.split(key, 3)
    sem = jax.random.normal(k_sem, (batch, hidden_dim), jnp.float32)
    origin_embedding = jax.random.normal(k_org, (batch, input_dim), jnp.float32)

    params = init_params(k_params, hidden_dim, input_dim, output_dim, d_ff)
    folded = fold_affine(params, output_dim)
    pack = 128 // math.gcd(128, output_dim)          # 4 -> 128-lane-dense output
    packed = pack_for_tpu(folded, output_dim, pack)

    out = low_dim_generate(sem, origin_embedding, packed, pack=pack,
                           rows_per_block=2048)
    out = jax.block_until_ready(out)

    ref = reference(sem, origin_embedding, params)
    assert out.shape == (batch, output_dim)
    assert jnp.allclose(out, ref, atol=1e-2, rtol=1e-2), "mismatch vs reference"
    print("KERNEL_OK")
</pallas_src>

<mosaic_0001>
module attributes {stable_mosaic.version = 11 : i64} {
  func.func @low_dim_generate_kernel(%arg0: i32, %arg1: memref<32x128xf32, #tpu.memory_space<vmem>>, %arg2: memref<32x256xf32, #tpu.memory_space<vmem>>, %arg3: memref<128x128xf32, #tpu.memory_space<vmem>>, %arg4: memref<256x128xf32, #tpu.memory_space<vmem>>, %arg5: memref<1x128xf32, #tpu.memory_space<vmem>>, %arg6: memref<128x128xf32, #tpu.memory_space<vmem>>, %arg7: memref<128x128xf32, #tpu.memory_space<vmem>>, %arg8: memref<128x128xf32, #tpu.memory_space<vmem>>, %arg9: memref<32x128xf32, #tpu.memory_space<vmem>>) attributes {dimension_semantics = [#tpu.dimension_semantics<parallel>], iteration_bounds = array<i64: 2>, scalar_prefetch = 0 : i64, scratch_operands = 0 : i64, tpu.core_type = #tpu.core_type<tc>, window_params = [{transform_indices = @transform_0, window_bounds = array<i64: 32, 128>}, {transform_indices = @transform_1, window_bounds = array<i64: 32, 256>}, {pipeline_mode = #tpu.pipeline_mode<synchronous>, transform_indices = @transform_2, window_bounds = array<i64: 128, 128>}, {pipeline_mode = #tpu.pipeline_mode<synchronous>, transform_indices = @transform_3, window_bounds = array<i64: 256, 128>}, {pipeline_mode = #tpu.pipeline_mode<synchronous>, transform_indices = @transform_4, window_bounds = array<i64: 1, 128>}, {pipeline_mode = #tpu.pipeline_mode<synchronous>, transform_indices = @transform_5, window_bounds = array<i64: 128, 128>}, {pipeline_mode = #tpu.pipeline_mode<synchronous>, transform_indices = @transform_6, window_bounds = array<i64: 128, 128>}, {pipeline_mode = #tpu.pipeline_mode<synchronous>, transform_indices = @transform_7, window_bounds = array<i64: 128, 128>}, {transform_indices = @transform_8, window_bounds = array<i64: 32, 128>}]} {
    %c0 = arith.constant 0 : index
    %c0_0 = arith.constant 0 : index
    %0 = vector.load %arg1[%c0, %c0_0] : memref<32x128xf32, #tpu.memory_space<vmem>>, vector<32x128xf32>
    %c0_1 = arith.constant 0 : index
    %c0_2 = arith.constant 0 : index
    %1 = vector.load %arg3[%c0_1, %c0_2] : memref<128x128xf32, #tpu.memory_space<vmem>>, vector<128x128xf32>
    %cst = arith.constant dense<0.000000e+00> : vector<32x128xf32>
    %2 = tpu.matmul %0, %1, %cst {dimension_numbers = #tpu.dot_dimension_numbers<[1], [0], [0], [1], [0, 0, 1, 1], [], []>} : vector<32x128xf32>, vector<128x128xf32>, vector<32x128xf32> -> vector<32x128xf32>
    %c0_3 = arith.constant 0 : index
    %c0_4 = arith.constant 0 : index
    %3 = vector.load %arg2[%c0_3, %c0_4] : memref<32x256xf32, #tpu.memory_space<vmem>>, vector<32x256xf32>
    %c0_5 = arith.constant 0 : index
    %c0_6 = arith.constant 0 : index
    %4 = vector.load %arg4[%c0_5, %c0_6] : memref<256x128xf32, #tpu.memory_space<vmem>>, vector<256x128xf32>
    %cst_7 = arith.constant dense<0.000000e+00> : vector<32x128xf32>
    %5 = tpu.matmul %3, %4, %cst_7 {dimension_numbers = #tpu.dot_dimension_numbers<[1], [0], [0], [1], [0, 0, 1, 1], [], []>} : vector<32x256xf32>, vector<256x128xf32>, vector<32x128xf32> -> vector<32x128xf32>
    %6 = arith.addf %2, %5 : vector<32x128xf32>
    %c0_8 = arith.constant 0 : index
    %c0_9 = arith.constant 0 : index
    %7 = vector.load %arg5[%c0_8, %c0_9] : memref<1x128xf32, #tpu.memory_space<vmem>>, vector<1x128xf32>
    %8 = vector.broadcast %7 : vector<1x128xf32> to vector<32x128xf32>
    %9 = arith.addf %6, %8 : vector<32x128xf32>
    %c0_10 = arith.constant 0 : index
    %c0_11 = arith.constant 0 : index
    %10 = vector.load %arg6[%c0_10, %c0_11] : memref<128x128xf32, #tpu.memory_space<vmem>>, vector<128x128xf32>
    %cst_12 = arith.constant dense<0.000000e+00> : vector<32x128xf32>
    %11 = tpu.matmul %9, %10, %cst_12 {dimension_numbers = #tpu.dot_dimension_numbers<[1], [0], [0], [1], [0, 0, 1, 1], [], []>} : vector<32x128xf32>, vector<128x128xf32>, vector<32x128xf32> -> vector<32x128xf32>
    %cst_13 = arith.constant 0.000000e+00 : f32
    %12 = vector.broadcast %cst_13 : f32 to vector<32x128xf32>
    %13 = arith.maximumf %11, %12 : vector<32x128xf32>
    %c0_14 = arith.constant 0 : index
    %c0_15 = arith.constant 0 : index
    %14 = vector.load %arg7[%c0_14, %c0_15] : memref<128x128xf32, #tpu.memory_space<vmem>>, vector<128x128xf32>
    %cst_16 = arith.constant dense<0.000000e+00> : vector<32x128xf32>
    %15 = tpu.matmul %13, %14, %cst_16 {dimension_numbers = #tpu.dot_dimension_numbers<[1], [0], [0], [1], [0, 0, 1, 1], [], []>} : vector<32x128xf32>, vector<128x128xf32>, vector<32x128xf32> -> vector<32x128xf32>
    %16 = arith.addf %15, %9 : vector<32x128xf32>
    %c0_17 = arith.constant 0 : index
    %c0_18 = arith.constant 0 : index
    %17 = vector.load %arg8[%c0_17, %c0_18] : memref<128x128xf32, #tpu.memory_space<vmem>>, vector<128x128xf32>
    %cst_19 = arith.constant dense<0.000000e+00> : vector<32x128xf32>
    %18 = tpu.matmul %16, %17, %cst_19 {dimension_numbers = #tpu.dot_dimension_numbers<[1], [0], [0], [1], [0, 0, 1, 1], [], []>} : vector<32x128xf32>, vector<128x128xf32>, vector<32x128xf32> -> vector<32x128xf32>
    %19 = arith.subf %16, %18 : vector<32x128xf32>
    %20 = arith.mulf %19, %19 : vector<32x128xf32>
    %c0_20 = arith.constant 0 : index
    %c0_21 = arith.constant 0 : index
    %21 = vector.load %arg8[%c0_20, %c0_21] : memref<128x128xf32, #tpu.memory_space<vmem>>, vector<128x128xf32>
    %cst_22 = arith.constant dense<0.000000e+00> : vector<32x128xf32>
    %22 = tpu.matmul %20, %21, %cst_22 {dimension_numbers = #tpu.dot_dimension_numbers<[1], [0], [0], [1], [0, 0, 1, 1], [], []>} : vector<32x128xf32>, vector<128x128xf32>, vector<32x128xf32> -> vector<32x128xf32>
    %cst_23 = arith.constant 9.99999974E-6 : f32
    %23 = vector.broadcast %cst_23 : f32 to vector<32x128xf32>
    %24 = arith.addf %22, %23 : vector<32x128xf32>
    %25 = math.rsqrt %24 : vector<32x128xf32>
    %26 = arith.mulf %19, %25 : vector<32x128xf32>
    %c0_24 = arith.constant 0 : index
    %c0_25 = arith.constant 0 : index
    %27 = vector.load %arg9[%c0_24, %c0_25] : memref<32x128xf32, #tpu.memory_space<vmem>>, vector<32x128xf32>
    tpu.vector_store %arg9[%c0_24, %c0_25], %26 {strides = array<i32>} : memref<32x128xf32, #tpu.memory_space<vmem>>, vector<32x128xf32>,
    return
  }
  func.func @transform_0(%arg0: i32) -> (i32, i32) {
    %c0_i32 = arith.constant 0 : i32
    %c0_i32_0 = arith.constant 0 : i32
    return %arg0, %c0_i32 : i32, i32
  }
  func.func @transform_1(%arg0: i32) -> (i32, i32) {
    %c0_i32 = arith.constant 0 : i32
    %c0_i32_0 = arith.constant 0 : i32
    return %arg0, %c0_i32 : i32, i32
  }
  func.func @transform_2(%arg0: i32) -> (i32, i32) {
    %c0_i32 = arith.constant 0 : i32
    %c0_i32_0 = arith.constant 0 : i32
    %c0_i32_1 = arith.constant 0 : i32
    return %c0_i32, %c0_i32_0 : i32, i32
  }
  func.func @transform_3(%arg0: i32) -> (i32, i32) {
    %c0_i32 = arith.constant 0 : i32
    %c0_i32_0 = arith.constant 0 : i32
    %c0_i32_1 = arith.constant 0 : i32
    return %c0_i32, %c0_i32_0 : i32, i32
  }
  func.func @transform_4(%arg0: i32) -> (i32, i32) {
    %c0_i32 = arith.constant 0 : i32
    %c0_i32_0 = arith.constant 0 : i32
    %c0_i32_1 = arith.constant 0 : i32
    return %c0_i32, %c0_i32_0 : i32, i32
  }
  func.func @transform_5(%arg0: i32) -> (i32, i32) {
    %c0_i32 = arith.constant 0 : i32
    %c0_i32_0 = arith.constant 0 : i32
    %c0_i32_1 = arith.constant 0 : i32
    return %c0_i32, %c0_i32_0 : i32, i32
  }
  func.func @transform_6(%arg0: i32) -> (i32, i32) {
    %c0_i32 = arith.constant 0 : i32
    %c0_i32_0 = arith.constant 0 : i32
    %c0_i32_1 = arith.constant 0 : i32
    return %c0_i32, %c0_i32_0 : i32, i32
  }
  func.func @transform_7(%arg0: i32) -> (i32, i32) {
    %c0_i32 = arith.constant 0 : i32
    %c0_i32_0 = arith.constant 0 : i32
    %c0_i32_1 = arith.constant 0 : i32
    return %c0_i32, %c0_i32_0 : i32, i32
  }
  func.func @transform_8(%arg0: i32) -> (i32, i32) {
    %c0_i32 = arith.constant 0 : i32
    %c0_i32_0 = arith.constant 0 : i32
    return %arg0, %c0_i32 : i32, i32
  }
}

</mosaic_0001>

<bundles_post_ra>
// kernel: tpu_custom_call.1
= control target key start
LH: loop header
LB: loop body
LE: loop exit
PB: predicated region body
PF: predicated region fallthrough
CT: control target
= control target key end

     0   :  { %s1919_s0 = inlined_call_operand.hbm [shape: f32[50,128], index: 0, kind: input, shape index: {}]   ;;  %s1920_s1 = inlined_call_operand.hbm [shape: f32[50,256], index: 1, kind: input, shape index: {}]   ;;  %s1921_s2 = inlined_call_operand.hbm [shape: f32[128,128], index: 2, kind: input, shape index: {}]   ;;  %s1922_s3 = inlined_call_operand.hbm [shape: f32[256,128], index: 3, kind: input, shape index: {}]   ;;  %s1923_s4 = inlined_call_operand.vmem [shape: f32[1,128], index: 4, kind: input, shape index: {}]   ;;  %s1924_s5 = inlined_call_operand.hbm [shape: f32[128,128], index: 5, kind: input, shape index: {}]   ;;  %s1925_s6 = inlined_call_operand.hbm [shape: f32[128,128], index: 6, kind: input, shape index: {}]   ;;  %s1926_s7 = inlined_call_operand.hbm [shape: f32[128,128], index: 7, kind: input, shape index: {}]   ;;  %s1927_s8 = inlined_call_operand.hbm [shape: f32[50,128], index: 8, kind: output, shape index: {}]  }
   0x1   :  { %1934 = sst [smem:[#allocation25_spill]] %s1922_s3 }
   0x2   :  { %1935 = sst [smem:[#allocation26_spill]] %s1925_s6 }
   0x3   :  { %13 = vsyncpa [#allocation3], 0 }
   0x4   :  { %15 = vsyncpa [#allocation3 + $0x1], 0 }
   0x5   :  { %16 = vsyncpa [#allocation6], 0 }
   0x6   :  { %18 = vsyncpa [#allocation6 + $0x1], 0 }
   0x7   :  { %19 = vsyncpa [#allocation9], 0 }
   0x8   :  { %20 = vsyncpa [#allocation12], 0 }
   0x9   :  { %21 = vsyncpa [#allocation4], 0 }
   0xa   :  { %23 = vsyncpa [#allocation4 + $0x1], 0  ;;  %s1582_s27 = smov 0   ;;  %s1584_s28 = smov 0  }
   0xb   :  { %s1586_s29 = smov 0   ;;  %s1588_s30 = smov 0  }
   0xc LB: > { %1936 = sst [smem:[#allocation21_spill]] %s1507_s27  ;;  %s1603_s9 = sadd.s32 4294967295, %s1519_s30   ;;  %s1519_s30 = sphi %s1588_s30, %s1962_s30   ;;  %s1515_s29 = sphi %s1586_s29, %s1966_s29   ;;  %s1511_s28 = sphi %s1584_s28, %s1965_s28   ;;  %s1507_s27 = sphi %s1582_s27, %s1964_s27  }
   0xd   : > { %s1027_s10 = sadd.s32 4294967294, %s1519_s30   ;;  %s1607_s11 = sadd.s32 1, %s1519_s30  }
   0xe   : > { %1937 = sst [smem:[#allocation22_spill]] %s1607_s11  ;;  %s36_s12 = sadd.s32 1, %s1515_s29 }
   0xf   : > { %s33_s13 = ssub.s32 %s1519_s30, %s1607_s11  ;;  %p43_p0 = scmp.ne.s32.totalorder %s1515_s29, %s1511_s28 }
  0x10   : > { %p34_p1 = scmp.eq.s32.totalorder %s33_s13, 0  ;;  %p44_p2 = scmp.eq.s32.totalorder %s1519_s30, 0 }
  0x11   : > { %p49_p3 = scmp.ne.s32.totalorder %s1511_s28, %s1507_s27  ;;  %p1933_p4 = scmp.eq.s32.totalorder %s1603_s9, 0 }
  0x12   : > { %s1619_s14 = scalar_select %p34_p1, %s1515_s29, %s36_s12  }
  0x13   : > { %p1621_p5 = por %p44_p2, %p43_p0  ;;  %p1627_p6 = por %p1933_p4, %p49_p3 }
  0x14   : > { %1938 = sst [smem:[#allocation23_spill]] %s1619_s14  ;;  %p225_p7 = scmp.eq.s32.totalorder %s1603_s9, 1 }
  0x15   : > { %p231_p8 = scmp.eq.s32.totalorder %s1027_s10, 1  ;;  %p1028_p9 = scmp.ge.s32.totalorder %s1519_s30, 1 }
  0x16   : > { %p238_p10 = scmp.lt.s32.totalorder %s1519_s30, 3  ;;  %p1634_p11 = por %p225_p7, %p43_p0 }
  0x17   : > { %p1638_p12 = por %p231_p8, %p49_p3  ;;  %s1945_s3 = sld [smem:[#allocation25_spill]] }
  0x18   : > { %s1941_s17 = scalar_select %p1634_p11, 1, 0 }
  0x19   : > { %s1942_s18 = scalar_select %p1638_p12, 1, 0 }
  0x1a   : > { %p1642_p13 = pnand %p1028_p9, %p238_p10  ;;  %s1521_s24 = smov [#allocation8]  }
  0x1b   : > { %1943 = sst [smem:[#allocation24_spill]] %s1942_s18  ;;  %s265_s25 = sshll.u32 %s1521_s24, 4  ;;  %s266_s25 = int_to_ptr.vmem [resolvable:$true] %s265_s25 }
  0x1c   : > { %p1113_p1 = pneg %p1642_p13  ;;  %s1947_s6 = sld [smem:[#allocation26_spill]] }
  0x1d   : > { %s263_s22 = sshll.u32 %s1945_s3, 4  ;;  %s1522_s13 = smov 128   ;;  %s264_s22 = int_to_ptr.hbm [resolvable:$true] %s263_s22 }
  0x1e   : > { %p1653_p0 = pnand %p1113_p1, %p1933_p4  ;;  %s1523_s20 = smov 8  }
  0x1f   : > { %s249_s14 = sshll.u32 %s1921_s2, 4  ;;  %s1524_s11 = smov [#allocation11]   ;;  %s250_s14 = int_to_ptr.hbm [resolvable:$true] %s249_s14 }
  0x20   : > { %1119 = dma.hbm_to_vmem [thread:$0]  (!%p1653_p0), %s264_s22, 4096, %s266_s25, [#allocation9], %s1522_s13, %s1522_s13, %s1523_s20  }
  0x21   : > { %s296_s18 = sshll.u32 %s1524_s11, 4  ;;  %s1525_s24 = smov [#allocation7]   ;;  %s297_s18 = int_to_ptr.vmem [resolvable:$true] %s296_s18 }
  0x22   : > { %s294_s12 = sshll.u32 %s1947_s6, 4  ;;  %s251_s26 = sshll.u32 %s1525_s24, 4  ;;  %s295_s12 = int_to_ptr.hbm [resolvable:$true] %s294_s12  ;;  %s252_s26 = int_to_ptr.vmem [resolvable:$true] %s251_s26 }
  0x23   : > { %1125 = dma.hbm_to_vmem [thread:$0]  (!%p1653_p0), %s295_s12, 2048, %s297_s18, [#allocation12], %s1522_s13, %s1522_s13, %s1523_s20  }
  0x24   : > { %s280_s27 = sshll.u32 %s1924_s5, 4  ;;  %s308_s25 = sshll.u32 %s1926_s7, 4  ;;  %s281_s27 = int_to_ptr.hbm [resolvable:$true] %s280_s27  ;;  %s309_s25 = int_to_ptr.hbm [resolvable:$true] %s308_s25 }
  0x25   : > { %1116 = dma.hbm_to_vmem [thread:$0]  (!%p1653_p0), %s250_s14, 2048, %s252_s26, [#allocation6], %s1522_s13, %s1522_s13, %s1523_s20  }
  0x26   : > { %s1526_s11 = smov [#allocation10]   ;;  %s1527_s18 = smov [#allocation13]  }
  0x27   : > { %s282_s21 = sshll.u32 %s1526_s11, 4  ;;  %s310_s12 = sshll.u32 %s1527_s18, 4  ;;  %s283_s21 = int_to_ptr.vmem [resolvable:$true] %s282_s21  ;;  %s311_s12 = int_to_ptr.vmem [resolvable:$true] %s310_s12 }
  0x28   : > { %1122 = dma.hbm_to_vmem [thread:$0]  (!%p1653_p0), %s281_s27, 2048, %s283_s21, [#allocation9], %s1522_s13, %s1522_s13, %s1523_s20  }
  0x29   : > { %1128 = dma.hbm_to_vmem [thread:$0]  (!%p1653_p0), %s309_s25, 2048, %s311_s12, [#allocation12], %s1522_s13, %s1522_s13, %s1523_s20  }
  0x2a   : > { %p1932_p2 = scmp.ge.s32.totalorder %s1519_s30, 2 }
  0x2c   : > { %320 = sbr.rel (%p1932_p2) target bundleno = 121 (0x79), region = 40 }
  0x31   : > { %323 = sbr.rel (!%p1621_p5) target bundleno = 85 (0x55), region = 44  ;;  %s324_s6 = sand.u32 (%p1621_p5), 1, %s1515_s29  }
  0x32   : > { %s1036_s14 = sshll.u32 (%p1621_p5), %s1519_s30, 2  ;;  %s1035_s24 = sshll.u32 (%p1621_p5), %s324_s6, 5 }
  0x33   : > { %s330_s26 = ssub.s32 (%p1621_p5), 7, %s1036_s14  ;;  %s1689_s20 = scalar_lea.sflag (%p1621_p5), [#allocation3], %s324_s6 }
  0x34   : > { %p331_p3 = scmp.lt.s32.totalorder (%p1621_p5), %s330_s26, 4  ;;  %s328_s10 = scalar_lea.vmem (%p1621_p5), [#allocation2], %s1035_s24 }
  0x36   : > { %s1968_s26 = smov (!%p331_p3, %s330_s26), 4 }
  0x37   : > { %s1037_s27 = sshll.u32 %s1968_s26, 3 }
  0x38   : > { %s334_s23 = ssub.s32 32, %s1037_s27 }
  0x39   : > { %s335_s13 = sshll.u32 %s334_s23, 4 }
  0x3a   : > { %336 = vsyncadd %s1689_s20, %s335_s13  ;;  %p1692_p7 = scmp.ne.s32.totalorder %s1037_s27, 0  ;;  %s1069_s22 = sshll.u32 %s1519_s30, 5 }
  0x3b   : > { %s339_s21 = scalar_lea.hbm %s1919_s0, %s1069_s22  ;;  %s1700_s18 = sshll.u32 %s328_s10, 4  ;;  %s344_s18 = int_to_ptr.vmem [resolvable:$true] %s1700_s18 }
  0x3c   : > { %s341_s12 = sshll.u32 %s339_s21, 4  ;;  %s1041_s6 = sshll.u32 %s1968_s26, 7  ;;  %s1703_s12 = int_to_ptr.hbm [resolvable:$true] %s341_s12 }
  0x3d   : > { %s1348_s14 = sshra.s32 %s1703_s12, 4  ;;  %s1350_s24 = sshrl.u32 %s1041_s6, 4  ;;  %s1349_s14 = int_to_ptr.hbm [resolvable:$true] %s1348_s14 }
  0x3e   : > { %s1355_s27 = scalar_lea.hbm %s1349_s14, %s1350_s24  ;;  %s1359_s10 = scalar_lea.hbm %s1919_s0, 56 }
  0x3f   : > { %p1356_p8 = scmp.ne.s32.totalorder %s1349_s14, %s1355_s27  ;;  %p1360_p1 = scmp.lt.s32.totalorder %s1349_s14, %s1919_s0 }
  0x40   : > { %p1361_p0 = scmp.lt.s32.totalorder %s1359_s10, %s1355_s27 }
  0x41   : > { %p1357_p9 = pnand %p1356_p8, %p1692_p7 }
  0x42   : > { %p1362_p3 = por %p1361_p0, %p1360_p1 }
  0x43   : > { %p1358_p10 = pneg %p1357_p9 }
  0x45   : > { %p1363_p2 = pnand %p1362_p3, %p1358_p10 }
  0x47   : > { %1366 = shalt.err (!%p1363_p2)
}
  0x48   : > { %s1367_s11 = sshra.s32 %s344_s18, 4  ;;  %s1528_s23 = smov [#allocation2]   ;;  %s1368_s11 = int_to_ptr.vmem [resolvable:$true] %s1367_s11 }
  0x49   : > { %s1374_s21 = scalar_lea.vmem %s1368_s11, %s1350_s24  ;;  %s1378_s13 = scalar_lea.vmem %s1528_s23, 64 }
  0x4a   : > { %p1375_p8 = scmp.ne.s32.totalorder %s1368_s11, %s1374_s21  ;;  %p1380_p12 = scmp.lt.s32.totalorder %s1378_s13, %s1374_s21 }
  0x4c   : > { %p1376_p9 = pnand %p1375_p8, %p1692_p7 }
  0x4e   : > { %p1377_p4 = pneg %p1376_p9 }
  0x50   : > { %p1382_p11 = pnand %p1380_p12, %p1377_p4 }
  0x52   : > { %1385 = shalt.err (!%p1382_p11)
}
  0x53   : > { %s1529_s14 = smov 128   ;;  %s1530_s27 = smov 8  }
  0x54   : > { %349 = dma.hbm_to_vmem [thread:$0]  (%p1692_p7), %s1703_s12, %s1041_s6, %s344_s18, %s1689_s20, %s1529_s14, %s1529_s14, %s1530_s27  }
  0x55 PF: > { %352 = sbr.rel (!%p1621_p5) target bundleno = 121 (0x79), region = 48  ;;  %s353_s24 = sand.u32 (%p1621_p5), 1, %s1519_s30  }
  0x56   : > { %s355_s10 = sand.u32 (%p1621_p5), 1, %s1515_s29   ;;  %s1043_s25 = sshll.u32 (%p1621_p5), %s1519_s30, 2 }
  0x57   : > { %s1042_s22 = sshll.u32 (%p1621_p5), %s355_s10, 6  ;;  %s359_s11 = ssub.s32 (%p1621_p5), 7, %s1043_s25 }
  0x58   : > { %p360_p4 = scmp.lt.s32.totalorder (%p1621_p5), %s359_s11, 4  ;;  %s1737_s20 = scalar_lea.sflag (%p1621_p5), [#allocation6], %s353_s24 }
  0x59   : > { %s357_s15 = scalar_lea.vmem (%p1621_p5), [#allocation5], %s1042_s22 }
  0x5a   : > { %s1970_s11 = smov (!%p360_p4, %s359_s11), 4 }
  0x5b   : > { %s1070_s3 = sshll.u32 %s1970_s11, 4 }
  0x5c   : > { %s364_s21 = ssub.s32 64, %s1070_s3 }
  0x5d   : > { %s365_s26 = sshll.u32 %s364_s21, 4 }
  0x5e   : > { %366 = vsyncadd %s1737_s20, %s365_s26  ;;  %p1740_p5 = scmp.ne.s32.totalorder %s1070_s3, 0  ;;  %s1072_s12 = sshll.u32 %s1519_s30, 6 }
  0x5f   : > { %s370_s13 = scalar_lea.hbm %s1920_s1, %s1072_s12  ;;  %s1748_s14 = sshll.u32 %s357_s15, 4  ;;  %s375_s14 = int_to_ptr.vmem [resolvable:$true] %s1748_s14 }
  0x60   : > { %s372_s27 = sshll.u32 %s370_s13, 4  ;;  %s1050_s24 = sshll.u32 %s1970_s11, 8  ;;  %s1751_s27 = int_to_ptr.hbm [resolvable:$true] %s372_s27 }
  0x61   : > { %s1387_s10 = sshra.s32 %s1751_s27, 4  ;;  %s1389_s22 = sshrl.u32 %s1050_s24, 4  ;;  %s1388_s10 = int_to_ptr.hbm [resolvable:$true] %s1387_s10 }
  0x62   : > { %s1394_s25 = scalar_lea.hbm %s1388_s10, %s1389_s22  ;;  %s1398_s26 = scalar_lea.hbm %s1920_s1, 112 }
  0x63   : > { %p1395_p11 = scmp.ne.s32.totalorder %s1388_s10, %s1394_s25  ;;  %p1399_p7 = scmp.lt.s32.totalorder %s1388_s10, %s1920_s1 }
  0x64   : > { %p1400_p10 = scmp.lt.s32.totalorder %s1398_s26, %s1394_s25 }
  0x65   : > { %p1396_p12 = pnand %p1395_p11, %p1740_p5 }
  0x66   : > { %p1401_p1 = por %p1400_p10, %p1399_p7 }
  0x67   : > { %p1397_p2 = pneg %p1396_p12 }
  0x69   : > { %p1402_p0 = pnand %p1401_p1, %p1397_p2 }
  0x6b   : > { %1405 = shalt.err (!%p1402_p0)
}
  0x6c   : > { %s1406_s6 = sshra.s32 %s375_s14, 4  ;;  %s1531_s13 = smov [#allocation5]   ;;  %s1407_s6 = int_to_ptr.vmem [resolvable:$true] %s1406_s6 }
  0x6d   : > { %s1413_s23 = scalar_lea.vmem %s1407_s6, %s1389_s22  ;;  %s1417_s3 = scalar_lea.vmem %s1531_s13, 128 }
  0x6e   : > { %p1414_p3 = scmp.ne.s32.totalorder %s1407_s6, %s1413_s23  ;;  %p1419_p4 = scmp.lt.s32.totalorder %s1417_s3, %s1413_s23 }
  0x70   : > { %p1415_p8 = pnand %p1414_p3, %p1740_p5 }
  0x72   : > { %p1416_p9 = pneg %p1415_p8 }
  0x74   : > { %p1421_p11 = pnand %p1419_p4, %p1416_p9 }
  0x76   : > { %1424 = shalt.err (!%p1421_p11)
}
  0x77   : > { %s1532_s10 = smov 256   ;;  %s1533_s25 = smov 16  }
  0x78   : > { %380 = dma.hbm_to_vmem [thread:$0]  (%p1740_p5), %s1751_s27, %s1050_s24, %s375_s14, %s1737_s20, %s1532_s10, %s1532_s10, %s1533_s25  }
  0x79 PF: > { %386 = sbr.rel (%p1642_p13) target bundleno = 916 (0x394), region = 52  ;;  %s1780_s22 = sand.u32 (!%p1642_p13), 1, %s1511_s28  }
  0x7a   : > { %s1052_s21 = sshll.u32 (!%p1642_p13), %s1780_s22, 5  ;;  %s389_s26 = scalar_lea.sflag (!%p1642_p13), [#allocation3], %s1780_s22 }
  0x7b   : > { %s1786_s15 = scalar_lea.vmem (!%p1642_p13), [#allocation2], %s1052_s21 }
  0x7e   : > { %1482 = dma.done.wait (%p1627_p6), %s389_s26, 512  }
  0x7f   : > { %1484 = vsyncadd (%p1627_p6), %s389_s26, 4294966784  ;;  %s398_s19 = sand.u32 1, %s1603_s9   ;;  %s1053_s11 = sshll.u32 %s1780_s22, 6 }
  0x80   : > { %s399_s20 = scalar_lea.sflag [#allocation6], %s398_s19  ;;  %s1794_s18 = scalar_lea.vmem [#allocation5], %s1053_s11 }
  0x81   : > { %1486 = dma.done.wait (%p1627_p6), %s399_s20, 1024  }
  0x82   : > { %1488 = vsyncadd (%p1627_p6), %s399_s20, 4294966272  ;;  %p1950_p13 = scmp.eq.s32.totalorder %s1603_s9, 0 }
  0x84   : > { %1490 = dma.done.wait (%p1950_p13), [#allocation6], 2048   ;;  %p1951_p5 = pmov %p1950_p13 }
  0x86   : > { %1492 = vsyncadd (%p1951_p5), [#allocation6], 4294965248  ;;  %p1952_p12 = pmov %p1951_p5 }
  0x87   : > { %p1953_p2 = pmov %p1951_p5 }
  0x88   : > { %1494 = dma.done.wait (%p1952_p12), [#allocation9], 6144  }
  0x89   : > { %1496 = vsyncadd (%p1953_p2), [#allocation9], 4294961152  ;;  %p1954_p7 = pmov %p1953_p2 }
  0x8a   : > { %p1955_p10 = pmov %p1953_p2 }
  0x8b   : > { %1498 = dma.done.wait (%p1954_p7), [#allocation12], 4096  }
  0x8c   : > { %1500 = vsyncadd (%p1955_p10), [#allocation12], 4294963200  ;;  %v501_v0 = vld [vmem:[#allocation7 + $0x78] sm:$0xff]  ;;  %v500_v1 = vld [vmem:[#allocation7 + $0x70] sm:$0xff]  ;;  %s1849_s27 = scalar_lea.vmem [#allocation14], %s1052_s21  ;;  %s862_s24 = scalar_lea.sflag [#allocation4], %s1780_s22 }
  0x8d   : > { %v525_v2 = vld [vmem:[#allocation8 + $0x78] sm:$0xff]  ;;  %600 = vmatpush.msra.mxu2 %v501_v0  ;;  %v524_v4 = vld [vmem:[#allocation8 + $0x70] sm:$0xff]  ;;  %v499_v5 = vld [vmem:[#allocation7 + $0x68] sm:$0xff]  ;;  %p1956_p6 = scmp.ne.s32.totalorder %s1941_s17, 0 }
  0x8e   : > { %542 = vmatpush.msra.mxu0 %v525_v2  ;;  %v541_v3 = vld [vmem:[#allocation8 + $0xf8] sm:$0xff]  ;;  %v540_v6 = vld [vmem:[#allocation8 + $0xf0] sm:$0xff]  ;;  %v523_v7 = vld [vmem:[#allocation8 + $0x68] sm:$0xff]  ;;  %s1061_s12 = sshll.u32 (%p1956_p6), %s1603_s9, 2 }
  0x8f   : > { %571 = vmatpush.msra.mxu1 %v541_v3  ;;  %601 = vmatpush.msra.mxu2 %v500_v1  ;;  %v539_v8 = vld [vmem:[#allocation8 + $0xe8] sm:$0xff]  ;;  %v498_v9 = vld [vmem:[#allocation7 + $0x60] sm:$0xff]  ;;  %v497_v12 = vld [vmem:[#allocation7 + $0x58] sm:$0xff]  ;;  %s870_s6 = ssub.s32 (%p1956_p6), 7, %s1061_s12 }
  0x90   : > { %543 = vmatpush.msra.mxu0 %v524_v4  ;;  %v522_v10 = vld [vmem:[#allocation8 + $0x60] sm:$0xff]  ;;  %v521_v13 = vld [vmem:[#allocation8 + $0x58] sm:$0xff]  ;;  %v496_v15 = vld [vmem:[#allocation7 + $0x50] sm:$0xff]  ;;  %p871_p1 = scmp.lt.s32.totalorder (%p1956_p6), %s870_s6, 4 }
  0x91   : > { %572 = vmatpush.msra.mxu1 %v540_v6  ;;  %602 = vmatpush.msra.mxu2 %v499_v5  ;;  %v538_v11 = vld [vmem:[#allocation8 + $0xe0] sm:$0xff]  ;;  %v537_v14 = vld [vmem:[#allocation8 + $0xd8] sm:$0xff]  ;;  %v520_v16 = vld [vmem:[#allocation8 + $0x50] sm:$0xff] }
  0x92   : > { %544 = vmatpush.msra.mxu0 %v523_v7  ;;  %v536_v17 = vld [vmem:[#allocation8 + $0xd0] sm:$0xff]  ;;  %v495_v18 = vld [vmem:[#allocation7 + $0x48] sm:$0xff]  ;;  %v494_v21 = vld [vmem:[#allocation7 + $0x40] sm:$0xff] }
  0x93   : > { %573 = vmatpush.msra.mxu1 %v539_v8  ;;  %603 = vmatpush.msra.mxu2 %v498_v9  ;;  %v519_v19 = vld [vmem:[#allocation8 + $0x48] sm:$0xff]  ;;  %v518_v22 = vld [vmem:[#allocation8 + $0x40] sm:$0xff]  ;;  %v493_v24 = vld [vmem:[#allocation7 + $0x38] sm:$0xff] }
  0x94   : > { %545 = vmatpush.msra.mxu0 %v522_v10  ;;  %v535_v20 = vld [vmem:[#allocation8 + $0xc8] sm:$0xff]  ;;  %v534_v23 = vld [vmem:[#allocation8 + $0xc0] sm:$0xff]  ;;  %v517_v25 = vld [vmem:[#allocation8 + $0x38] sm:$0xff] }
  0x95   : > { %574 = vmatpush.msra.mxu1 %v538_v11  ;;  %604 = vmatpush.msra.mxu2 %v497_v12  ;;  %v533_v26 = vld [vmem:[#allocation8 + $0xb8] sm:$0xff]  ;;  %v492_v27 = vld [vmem:[#allocation7 + $0x30] sm:$0xff]  ;;  %v491_v30 = vld [vmem:[#allocation7 + $0x28] sm:$0xff] }
  0x96   : > { %546 = vmatpush.msra.mxu0 %v521_v13  ;;  %v516_v28 = vld [vmem:[#allocation8 + $0x30] sm:$0xff]  ;;  %v515_v31 = vld [vmem:[#allocation8 + $0x28] sm:$0xff]  ;;  %v490_v33 = vld [vmem:[#allocation7 + $0x20] sm:$0xff] }
  0x97   : > { %575 = vmatpush.msra.mxu1 %v537_v14  ;;  %605 = vmatpush.msra.mxu2 %v496_v15  ;;  %v532_v29 = vld [vmem:[#allocation8 + $0xb0] sm:$0xff]  ;;  %v531_v32 = vld [vmem:[#allocation8 + $0xa8] sm:$0xff]  ;;  %v514_v34 = vld [vmem:[#allocation8 + $0x20] sm:$0xff] }
  0x98   : > { %547 = vmatpush.msra.mxu0 %v520_v16  ;;  %v530_v35 = vld [vmem:[#allocation8 + $0xa0] sm:$0xff]  ;;  %v489_v36 = vld [vmem:[#allocation7 + $0x18] sm:$0xff]  ;;  %v488_v39 = vld [vmem:[#allocation7 + $0x10] sm:$0xff] }
  0x99   : > { %576 = vmatpush.msra.mxu1 %v536_v17  ;;  %606 = vmatpush.msra.mxu2 %v495_v18  ;;  %v513_v37 = vld [vmem:[#allocation8 + $0x18] sm:$0xff]  ;;  %v512_v40 = vld [vmem:[#allocation8 + $0x10] sm:$0xff]  ;;  %v487_v44 = vld [vmem:[#allocation7 + $0x8] sm:$0xff] }
  0x9a   : > { %548 = vmatpush.msra.mxu0 %v519_v19  ;;  %v529_v38 = vld [vmem:[#allocation8 + $0x98] sm:$0xff]  ;;  %v528_v41 = vld [vmem:[#allocation8 + $0x90] sm:$0xff]  ;;  %v511_v45 = vld [vmem:[#allocation8 + $0x8] sm:$0xff] }
  0x9b   : > { %577 = vmatpush.msra.mxu1 %v535_v20  ;;  %607 = vmatpush.msra.mxu2 %v494_v21  ;;  %v652_v42 = vld [vmem:[#allocation10 + $0x78] sm:$0xff]  ;;  %v651_v43 = vld [vmem:[#allocation10 + $0x70] sm:$0xff]  ;;  %v527_v46 = vld [vmem:[#allocation8 + $0x88] sm:$0xff] }
  0x9c   : > { %549 = vmatpush.msra.mxu0 %v518_v22  ;;  %653 = vmatpush.msra.mxu3 %v652_v42  ;;  %v650_v47 = vld [vmem:[#allocation10 + $0x68] sm:$0xff]  ;;  %v486_v48 = vld [vmem:[#allocation7] sm:$0xff]  ;;  %v648_v55 = vld [vmem:[#allocation10 + $0x58] sm:$0xff] }
  0x9d   : > { %578 = vmatpush.msra.mxu1 %v534_v23  ;;  %608 = vmatpush.msra.mxu2 %v493_v24  ;;  %v510_v49 = vld [vmem:[#allocation8] sm:$0xff]  ;;  %v503_v53 = vld [vmem:[%s1794_s18 + $0x8] sm:$0xff]  ;;  %v647_v56 = vld [vmem:[#allocation10 + $0x50] sm:$0xff] }
  0x9e   : > { %550 = vmatpush.msra.mxu0 %v517_v25  ;;  %654 = vmatpush.msra.mxu3 %v651_v43  ;;  %v482_v50 = vld [vmem:[%s1786_s15] sm:$0xff]  ;;  %v483_v57 = vld [vmem:[%s1786_s15 + $0x8] sm:$0xff]  ;;  %v504_v59 = vld [vmem:[%s1794_s18 + $0x10] sm:$0xff] }
  0x9f   : > { %579 = vmatpush.msra.mxu1 %v533_v26  ;;  %609 = vmatpush.msra.mxu2 %v492_v27  ;;  %v526_v51 = vld [vmem:[#allocation8 + $0x80] sm:$0xff]  ;;  %v646_v58 = vld [vmem:[#allocation10 + $0x48] sm:$0xff]  ;;  %v505_v60 = vld [vmem:[%s1794_s18 + $0x18] sm:$0xff] }
  0xa0   : > { %551 = vmatpush.msra.mxu0 %v516_v28  ;;  %v502_v52 = vld [vmem:[%s1794_s18] sm:$0xff]  ;;  %655 = vmatpush.msra.mxu3 %v650_v47  ;;  %v644_v62 = vld [vmem:[#allocation10 + $0x38] sm:$0xff]  ;;  %v643_v63 = vld [vmem:[#allocation10 + $0x30] sm:$0xff] }
  0xa1   : > { %580 = vmatpush.msra.mxu1 %v532_v29  ;;  %610 = vmatpush.msra.mxu2 %v491_v30  ;;  %v649_v54 = vld [vmem:[#allocation10 + $0x60] sm:$0xff]  ;;  %v484_v0 = vld [vmem:[%s1786_s15 + $0x10] sm:$0xff]  ;;  %v642_v1 = vld [vmem:[#allocation10 + $0x28] sm:$0xff] }
  0xa2   : > { %552 = vmatpush.msra.mxu0 %v515_v31  ;;  %656 = vmatpush.msra.mxu3 %v649_v54  ;;  %v645_v61 = vld [vmem:[#allocation10 + $0x40] sm:$0xff]  ;;  %v507_v3 = vld [vmem:[%s1794_s18 + $0x28] sm:$0xff]  ;;  %v485_v5 = vld [vmem:[%s1786_s15 + $0x18] sm:$0xff] }
  0xa3   : > { %581 = vmatpush.msra.mxu1 %v531_v32  ;;  %611 = vmatpush.msra.mxu2 %v490_v33  ;;  %v506_v2 = vld [vmem:[%s1794_s18 + $0x20] sm:$0xff]  ;;  %v508_v6 = vld [vmem:[%s1794_s18 + $0x30] sm:$0xff]  ;;  %v509_v7 = vld [vmem:[%s1794_s18 + $0x38] sm:$0xff] }
  0xa4   : > { %553 = vmatpush.msra.mxu0 %v514_v34  ;;  %657 = vmatpush.msra.mxu3 %v648_v55  ;;  %v641_v4 = vld [vmem:[#allocation10 + $0x20] sm:$0xff]  ;;  %v640_v8 = vld [vmem:[#allocation10 + $0x18] sm:$0xff]  ;;  %v639_v9 = vld [vmem:[#allocation10 + $0x10] sm:$0xff] }
  0xa5   : > { %582 = vmatpush.msra.mxu1 %v530_v35  ;;  %612 = vmatpush.msra.mxu2 %v489_v36  ;;  %v638_v10 = vld [vmem:[#allocation10 + $0x8] sm:$0xff]  ;;  %v637_v11 = vld [vmem:[#allocation10] sm:$0xff]  ;;  %v701_v15 = vld [vmem:[#allocation11 + $0x78] sm:$0xff] }
  0xa6   : > { %554 = vmatpush.msra.mxu0 %v513_v37  ;;  %658 = vmatpush.msra.mxu3 %v647_v56  ;;  %v700_v16 = vld [vmem:[#allocation11 + $0x70] sm:$0xff]  ;;  %v1189_v17 = vld [vmem:[%s1923_s4] ss:$0 sm:$0xff]  ;;  %v699_v18 = vld [vmem:[#allocation11 + $0x68] sm:$0xff] }
  0xa7   : > { %583 = vmatpush.msra.mxu1 %v529_v38  ;;  %613 = vmatpush.msra.mxu2 %v488_v39  ;;  %v698_v21 = vld [vmem:[#allocation11 + $0x60] sm:$0xff]  ;;  %v697_v25 = vld [vmem:[#allocation11 + $0x58] sm:$0xff]  ;;  %v696_v27 = vld [vmem:[#allocation11 + $0x50] sm:$0xff] }
  0xa8   : > { %555 = vmatpush.msra.mxu0 %v512_v40  ;;  %659 = vmatpush.msra.mxu3 %v646_v58  ;;  %v695_v28 = vld [vmem:[#allocation11 + $0x48] sm:$0xff]  ;;  %v694_v31 = vld [vmem:[#allocation11 + $0x40] sm:$0xff]  ;;  %v693_v35 = vld [vmem:[#allocation11 + $0x38] sm:$0xff] }
  0xa9   : > { %584 = vmatpush.msra.mxu1 %v528_v41  ;;  %614 = vmatpush.msra.mxu2 %v487_v44  ;;  %v692_v37 = vld [vmem:[#allocation11 + $0x30] sm:$0xff]  ;;  %v691_v38 = vld [vmem:[#allocation11 + $0x28] sm:$0xff]  ;;  %v690_v41 = vld [vmem:[#allocation11 + $0x20] sm:$0xff] }
  0xaa   : > { %556 = vmatpush.msra.mxu0 %v511_v45  ;;  %660 = vmatpush.msra.mxu3 %v645_v61  ;;  %v689_v45 = vld [vmem:[#allocation11 + $0x18] sm:$0xff]  ;;  %v688_v47 = vld [vmem:[#allocation11 + $0x10] sm:$0xff]  ;;  %v744_v55 = vld [vmem:[#allocation13 + $0x68] sm:$0xff] }
  0xab   : > { %585 = vmatpush.msra.mxu1 %v527_v46  ;;  %615 = vmatpush.msra.mxu2 %v486_v48  ;;  %v745_v54 = vld [vmem:[#allocation13 + $0x70] sm:$0xff]  ;;  %v743_v56 = vld [vmem:[#allocation13 + $0x60] sm:$0xff]  ;;  %v740_v61 = vld [vmem:[#allocation13 + $0x48] sm:$0xff] }
  0xac   : > { %557 = vmatpush.msra.mxu0 %v510_v49  ;;  %616 = vmatmul.f32.vlgmr.msra.gmra.mxu2 %v482_v50 }
  0xad   : > { %586 = vmatpush.msra.mxu1 %v526_v51  ;;  %558 = vmatmul.f32.vlgmr.msra.gmra.mxu0 %v502_v52  ;;  %v687_v51 = vld [vmem:[#allocation11 + $0x8] sm:$0xff]  ;;  %v686_v52 = vld [vmem:[#allocation11] sm:$0xff] }
  0xae   : > { %587 = vmatmul.f32.vlgmr.msra.gmra.mxu1 %v503_v53  ;;  %661 = vmatpush.msra.mxu3 %v644_v62  ;;  %v746_v53 = vld [vmem:[#allocation13 + $0x78] sm:$0xff]  ;;  %v739_v62 = vld [vmem:[#allocation13 + $0x40] sm:$0xff] }
  0xaf   : > { %702 = vmatpush.msrb.mxu0 %v701_v15  ;;  %747 = vmatpush.msrb.mxu1 %v746_v53 }
  0xb0   : > { %662 = vmatpush.msra.mxu3 %v643_v63  ;;  %784 = vmatpush.msrb.mxu2 %v746_v53 }
  0xb1   : > { %703 = vmatpush.msrb.mxu0 %v700_v16  ;;  %748 = vmatpush.msrb.mxu1 %v745_v54 }
  0xb2   : > { %663 = vmatpush.msra.mxu3 %v642_v1  ;;  %785 = vmatpush.msrb.mxu2 %v745_v54  ;;  %v738_v1 = vld [vmem:[#allocation13 + $0x38] sm:$0xff] }
  0xb3   : > { %704 = vmatpush.msrb.mxu0 %v699_v18  ;;  %749 = vmatpush.msrb.mxu1 %v744_v55 }
  0xb4   : > { %619 = vmatmul.f32.gmra.mxu2 %v483_v57  ;;  %664 = vmatpush.msra.mxu3 %v641_v4  ;;  %v735_v4 = vld [vmem:[#allocation13 + $0x20] sm:$0xff] }
  0xb5   : > { %561 = vmatmul.f32.gmra.mxu0 %v504_v59  ;;  %786 = vmatpush.msrb.mxu2 %v744_v55  ;;  %v742_v59 = vld [vmem:[#allocation13 + $0x58] sm:$0xff] }
  0xb6   : > { %590 = vmatmul.f32.gmra.mxu1 %v505_v60  ;;  %665 = vmatpush.msra.mxu3 %v640_v8  ;;  %v741_v60 = vld [vmem:[#allocation13 + $0x50] sm:$0xff] }
  0xb7   : > { %705 = vmatpush.msrb.mxu0 %v698_v21  ;;  %750 = vmatpush.msrb.mxu1 %v743_v56  ;;  %v733_v8 = vld [vmem:[#allocation13 + $0x10] sm:$0xff] }
  0xb8   : > { %666 = vmatpush.msra.mxu3 %v639_v9  ;;  %787 = vmatpush.msrb.mxu2 %v743_v56 }
  0xb9   : > { %706 = vmatpush.msrb.mxu0 %v697_v25  ;;  %751 = vmatpush.msrb.mxu1 %v742_v59 }
  0xba   : > { %667 = vmatpush.msra.mxu3 %v638_v10  ;;  %788 = vmatpush.msrb.mxu2 %v742_v59 }
  0xbb   : > { %707 = vmatpush.msrb.mxu0 %v696_v27  ;;  %752 = vmatpush.msrb.mxu1 %v741_v60 }
  0xbc   : > { %622 = vmatmul.f32.gmra.mxu2 %v484_v0  ;;  %668 = vmatpush.msra.mxu3 %v637_v11  ;;  %v732_v11 = vld [vmem:[#allocation13 + $0x8] sm:$0xff] }
  0xbd   : > { %564 = vmatmul.f32.gmra.mxu0 %v506_v2  ;;  %789 = vmatpush.msrb.mxu2 %v741_v60  ;;  %v737_v2 = vld [vmem:[#allocation13 + $0x30] sm:$0xff] }
  0xbe   : > { %593 = vmatmul.f32.gmra.mxu1 %v507_v3  ;;  %1074 = vmatpush.msrb.mxu3 %v701_v15  ;;  %v736_v3 = vld [vmem:[#allocation13 + $0x28] sm:$0xff] }
  0xbf   : > { %708 = vmatpush.msrb.mxu0 %v695_v28  ;;  %753 = vmatpush.msrb.mxu1 %v740_v61 }
  0xc0   : > { %1075 = vmatpush.msrb.mxu3 %v700_v16  ;;  %790 = vmatpush.msrb.mxu2 %v740_v61 }
  0xc1   : > { %709 = vmatpush.msrb.mxu0 %v694_v31  ;;  %754 = vmatpush.msrb.mxu1 %v739_v62 }
  0xc2   : > { %1076 = vmatpush.msrb.mxu3 %v699_v18  ;;  %791 = vmatpush.msrb.mxu2 %v739_v62 }
  0xc3   : > { %710 = vmatpush.msrb.mxu0 %v693_v35  ;;  %755 = vmatpush.msrb.mxu1 %v738_v1 }
  0xc4   : > { %625 = vmatmul.f32.gmra.mxu2 %v485_v5  ;;  %1077 = vmatpush.msrb.mxu3 %v698_v21 }
  0xc5   : > { %567 = vmatmul.f32.gmra.mxu0 %v508_v6  ;;  %792 = vmatpush.msrb.mxu2 %v738_v1 }
  0xc6   : > { %596 = vmatmul.f32.gmra.mxu1 %v509_v7  ;;  %1078 = vmatpush.msrb.mxu3 %v697_v25  ;;  %v734_v7 = vld [vmem:[#allocation13 + $0x18] sm:$0xff] }
  0xc7   : > { %711 = vmatpush.msrb.mxu0 %v692_v37  ;;  %756 = vmatpush.msrb.mxu1 %v737_v2 }
  0xc8   : > { %1079 = vmatpush.msrb.mxu3 %v696_v27  ;;  %793 = vmatpush.msrb.mxu2 %v737_v2 }
  0xc9   : > { %712 = vmatpush.msrb.mxu0 %v691_v38  ;;  %757 = vmatpush.msrb.mxu1 %v736_v3 }
  0xca   : > { %1080 = vmatpush.msrb.mxu3 %v695_v28  ;;  %794 = vmatpush.msrb.mxu2 %v736_v3 }
  0xcb   : > { %713 = vmatpush.msrb.mxu0 %v690_v41  ;;  %758 = vmatpush.msrb.mxu1 %v735_v4 }
  0xcc   : > { %1081 = vmatpush.msrb.mxu3 %v694_v31  ;;  %795 = vmatpush.msrb.mxu2 %v735_v4 }
  0xcd   : > { %714 = vmatpush.msrb.mxu0 %v689_v45  ;;  %759 = vmatpush.msrb.mxu1 %v734_v7 }
  0xce   : > { %1082 = vmatpush.msrb.mxu3 %v693_v35  ;;  %796 = vmatpush.msrb.mxu2 %v734_v7 }
  0xcf   : > { %715 = vmatpush.msrb.mxu0 %v688_v47  ;;  %760 = vmatpush.msrb.mxu1 %v733_v8 }
  0xd0   : > { %1083 = vmatpush.msrb.mxu3 %v692_v37  ;;  %797 = vmatpush.msrb.mxu2 %v733_v8 }
  0xd1   : > { %716 = vmatpush.msrb.mxu0 %v687_v51  ;;  %761 = vmatpush.msrb.mxu1 %v732_v11 }
  0xd2   : > { %1084 = vmatpush.msrb.mxu3 %v691_v38  ;;  %798 = vmatpush.msrb.mxu2 %v732_v11 }
  0xd3   : > { %717 = vmatpush.msrb.mxu0 %v686_v52 }
  0xd4   : > { %1085 = vmatpush.msrb.mxu3 %v690_v41 }
  0xd6   : > { %1086 = vmatpush.msrb.mxu3 %v689_v45 }
  0xd8   : > { %1087 = vmatpush.msrb.mxu3 %v688_v47 }
  0xda   : > { %1088 = vmatpush.msrb.mxu3 %v687_v51 }
  0xdc   : > { %1089 = vmatpush.msrb.mxu3 %v686_v52 }
 0x12a   : > { %v559_v12 = vpop.f32.mrf.mxu0 }
 0x12b   : > { %v588_v13 = vpop.f32.mrf.mxu1 }
 0x12c   : > { %v589_v14 = vadd.f32 %v588_v13, %v559_v12  ;;  %v731_v12 = vld [vmem:[#allocation13] sm:$0xff] }
 0x12d   : > { %762 = vmatpush.msrb.mxu1 %v731_v12  ;;  %799 = vmatpush.msrb.mxu2 %v731_v12 }
 0x12f   : > { %v617_v19 = vpop.f32.mrf.mxu2 }
 0x130   : > { %v618_v20 = vadd.f32 %v617_v19, %v589_v14 }
 0x132   : > { %v1827_v22 = vadd.f32 %v1189_v17, %v618_v20  ;;  %v562_v23 = vpop.f32.mrf.mxu0 }
 0x133   : > { %v591_v24 = vpop.f32.mrf.mxu1 }
 0x134   : > { %669 = vmatmul.f32.vlgmr.msra.gmra.mxu3 %v1827_v22  ;;  %v592_v26 = vadd.f32 %v591_v24, %v562_v23 }
 0x137   : > { %v620_v29 = vpop.f32.mrf.mxu2 }
 0x138   : > { %v621_v30 = vadd.f32 %v620_v29, %v592_v26 }
 0x13a   : > { %v1830_v32 = vadd.f32 %v1189_v17, %v621_v30  ;;  %v565_v33 = vpop.f32.mrf.mxu0 }
 0x13b   : > { %v594_v34 = vpop.f32.mrf.mxu1 }
 0x13c   : > { %672 = vmatmul.f32.gmra.mxu3 %v1830_v32  ;;  %v595_v36 = vadd.f32 %v594_v34, %v565_v33 }
 0x13f   : > { %v623_v39 = vpop.f32.mrf.mxu2 }
 0x140   : > { %v624_v40 = vadd.f32 %v623_v39, %v595_v36 }
 0x142   : > { %v1833_v42 = vadd.f32 %v1189_v17, %v624_v40  ;;  %v568_v43 = vpop.f32.mrf.mxu0 }
 0x143   : > { %v597_v44 = vpop.f32.mrf.mxu1 }
 0x144   : > { %675 = vmatmul.f32.gmra.mxu3 %v1833_v42  ;;  %v598_v46 = vadd.f32 %v597_v44, %v568_v43 }
 0x147   : > { %v626_v48 = vpop.f32.mrf.mxu2 }
 0x148   : > { %v627_v49 = vadd.f32 %v626_v48, %v598_v46 }
 0x14a   : > { %v1836_v50 = vadd.f32 %v1189_v17, %v627_v49 }
 0x14c   : > { %678 = vmatmul.f32.gmra.mxu3 %v1836_v50 }
 0x1b7   : > { %v670_v57 = vpop.f32.mrf.mxu3 }
 0x1b8   : > { %v682_v58 = vmax.f32 %v670_v57, 0.0 }
 0x1ba   : > { %718 = vmatmul.f32.vlgmr.msrb.gmra.mxu0 %v682_v58 }
 0x1bf   : > { %v673_v63 = vpop.f32.mrf.mxu3 }
 0x1c0   : > { %v683_v0 = vmax.f32 %v673_v63, 0.0 }
 0x1c2   : > { %721 = vmatmul.f32.vlgmr.msrb.gmra.mxu3 %v683_v0 }
 0x1c7   : > { %v676_v5 = vpop.f32.mrf.mxu3 }
 0x1c8   : > { %v684_v6 = vmax.f32 %v676_v5, 0.0 }
 0x1ca   : > { %724 = vmatmul.f32.gmra.mxu3 %v684_v6 }
 0x1cf   : > { %v679_v9 = vpop.f32.mrf.mxu3 }
 0x1d0   : > { %v685_v10 = vmax.f32 %v679_v9, 0.0 }
 0x1d2   : > { %727 = vmatmul.f32.gmra.mxu3 %v685_v10 }
 0x237   : > { %v719_v13 = vpop.f32.mrf.mxu0 }
 0x238   : > { %v720_v14 = vadd.f32 %v719_v13, %v1827_v22 }
 0x23a   : > { %763 = vmatmul.f32.vlgmr.msrb.gmra.mxu1 %v720_v14 }
 0x245   : > { %v722_v15 = vpop.f32.mrf.mxu3 }
 0x246   : > { %v723_v16 = vadd.f32 %v722_v15, %v1830_v32 }
 0x248   : > { %766 = vmatmul.f32.gmra.mxu1 %v723_v16 }
 0x24d   : > { %v725_v17 = vpop.f32.mrf.mxu3 }
 0x24e   : > { %v726_v18 = vadd.f32 %v725_v17, %v1833_v42 }
 0x250   : > { %769 = vmatmul.f32.gmra.mxu1 %v726_v18 }
 0x255   : > { %v728_v19 = vpop.f32.mrf.mxu3 }
 0x256   : > { %v729_v20 = vadd.f32 %v728_v19, %v1836_v50 }
 0x258   : > { %772 = vmatmul.f32.gmra.mxu1 %v729_v20 }
 0x2b7   : > { %v764_v21 = vpop.f32.mrf.mxu1 }
 0x2b8   : > { %v776_v23 = vsub.f32 %v720_v14, %v764_v21 }
 0x2ba   : > { %v780_v24 = vmul.f32 %v776_v23, %v776_v23 }
 0x2bc   : > { %800 = vmatmul.f32.vlgmr.msrb.gmra.mxu2 %v780_v24 }
 0x2c5   : > { %v767_v25 = vpop.f32.mrf.mxu1 }
 0x2c6   : > { %v777_v26 = vsub.f32 %v723_v16, %v767_v25 }
 0x2c8   : > { %v781_v22 = vmul.f32 %v777_v26, %v777_v26 }
 0x2ca   : > { %803 = vmatmul.f32.gmra.mxu2 %v781_v22 }
 0x2cd   : > { %v770_v27 = vpop.f32.mrf.mxu1 }
 0x2ce   : > { %v778_v28 = vsub.f32 %v726_v18, %v770_v27 }
 0x2d0   : > { %v782_v29 = vmul.f32 %v778_v28, %v778_v28 }
 0x2d2   : > { %806 = vmatmul.f32.gmra.mxu2 %v782_v29 }
 0x2d5   : > { %v773_v30 = vpop.f32.mrf.mxu1 }
 0x2d6   : > { %v1843_v31 = vsub.f32 %v729_v20, %v773_v30 }
 0x2d8   : > { %v783_v32 = vmul.f32 %v1843_v31, %v1843_v31 }
 0x2da   : > { %809 = vmatmul.f32.gmra.mxu2 %v783_v32 }
 0x33f   : > { %v801_v33 = vpop.f32.mrf.mxu2 }
 0x340   : > { %v802_v34 = vadd.f32 1e-05, %v801_v33 }
 0x342   : > { %1190 = vrsqrt.f32 %v802_v34  ;;  %vm819_vm1 = vweird.f32 %v802_v34 }
 0x348   : > { %v1191_v35 = vpop.eup %1190 }
 0x349   : > { %v814_v36 = vmul.f32 %v1191_v35, %v802_v34  ;;  %vm820_vm0 = vweird.f32 %v1191_v35 }
 0x34a   : > { %vm821_vm2 = vmor %vm819_vm1, %vm820_vm0 }
 0x34b   : > { %v815_v37 = vmul.f32 %v1191_v35, %v814_v36 }
 0x34d   : > { %v816_v38 = vmul.f32 0.5, %v815_v37  ;;  %v804_v39 = vpop.f32.mrf.mxu2 }
 0x34e   : > { %v805_v40 = vadd.f32 1e-05, %v804_v39 }
 0x34f   : > { %v817_v41 = vsub.f32 1.5, %v816_v38 }
 0x350   : > { %1192 = vrsqrt.f32 %v805_v40  ;;  %vm829_vm4 = vweird.f32 %v805_v40 }
 0x351   : > { %v818_v42 = vmul.f32 %v1191_v35, %v817_v41 }
 0x353   : > { %v822_v43 = vsel %vm821_vm2, %v1191_v35, %v818_v42 }
 0x354   : > { %v853_v44 = vmul.f32 %v822_v43, %v776_v23 }
 0x355   : > { %v807_v45 = vpop.f32.mrf.mxu2 }
 0x356   : > { %v1193_v46 = vpop.eup %1192  ;;  %857 = vst [vmem:[%s1849_s27] sm:$0xff] %v853_v44  ;;  %v808_v47 = vadd.f32 1e-05, %v807_v45 }
 0x357   : > { %v824_v48 = vmul.f32 %v1193_v46, %v805_v40  ;;  %vm830_vm3 = vweird.f32 %v1193_v46 }
 0x358   : > { %1194 = vrsqrt.f32 %v808_v47  ;;  %vm831_vm5 = vmor %vm829_vm4, %vm830_vm3  ;;  %vm839_vm7 = vweird.f32 %v808_v47 }
 0x359   : > { %v825_v49 = vmul.f32 %v1193_v46, %v824_v48 }
 0x35b   : > { %v826_v50 = vmul.f32 0.5, %v825_v49 }
 0x35d   : > { %v827_v51 = vsub.f32 1.5, %v826_v50  ;;  %v810_v52 = vpop.f32.mrf.mxu2 }
 0x35e   : > { %v1195_v53 = vpop.eup %1194  ;;  %v811_v54 = vadd.f32 1e-05, %v810_v52 }
 0x35f   : > { %v828_v55 = vmul.f32 %v1193_v46, %v827_v51  ;;  %v834_v56 = vmul.f32 %v1195_v53, %v808_v47  ;;  %vm840_vm6 = vweird.f32 %v1195_v53 }
 0x360   : > { %1196 = vrsqrt.f32 %v811_v54  ;;  %vm841_vm8 = vmor %vm839_vm7, %vm840_vm6  ;;  %vm849_vm10 = vweird.f32 %v811_v54 }
 0x361   : > { %v832_v57 = vsel %vm831_vm5, %v1193_v46, %v828_v55  ;;  %v835_v58 = vmul.f32 %v1195_v53, %v834_v56 }
 0x362   : > { %v854_v59 = vmul.f32 %v832_v57, %v777_v26 }
 0x363   : > { %v836_v60 = vmul.f32 0.5, %v835_v58 }
 0x364   : > { %858 = vst [vmem:[%s1849_s27 + $0x8] sm:$0xff] %v854_v59 }
 0x365   : > { %v837_v61 = vsub.f32 1.5, %v836_v60 }
 0x366   : > { %v1197_v62 = vpop.eup %1196 }
 0x367   : > { %v838_v63 = vmul.f32 %v1195_v53, %v837_v61  ;;  %v844_v0 = vmul.f32 %v1197_v62, %v811_v54  ;;  %vm850_vm9 = vweird.f32 %v1197_v62 }
 0x368   : > { %vm851_vm11 = vmor %vm849_vm10, %vm850_vm9 }
 0x369   : > { %v842_v1 = vsel %vm841_vm8, %v1195_v53, %v838_v63  ;;  %v845_v2 = vmul.f32 %v1197_v62, %v844_v0 }
 0x36a   : > { %v855_v3 = vmul.f32 %v842_v1, %v778_v28 }
 0x36b   : > { %v846_v4 = vmul.f32 0.5, %v845_v2 }
 0x36c   : > { %859 = vst [vmem:[%s1849_s27 + $0x10] sm:$0xff] %v855_v3 }
 0x36d   : > { %v847_v5 = vsub.f32 1.5, %v846_v4 }
 0x36f   : > { %v848_v6 = vmul.f32 %v1197_v62, %v847_v5 }
 0x370   : > { %868 = sbr.rel (!%p1956_p6) target bundleno = 916 (0x394), region = 84 }
 0x371   : > { %v852_v7 = vsel %vm851_vm11, %v1197_v62, %v848_v6 }
 0x372   : > { %v856_v8 = vmul.f32 %v852_v7, %v1843_v31 }
 0x374   : > { %860 = vst [vmem:[%s1849_s27 + $0x18] sm:$0xff] %v856_v8 }
 0x375   : > { %s1972_s6 = smov (!%p871_p1, %s870_s6), 4 }
 0x376   : > { %s1062_s23 = sshll.u32 %s1972_s6, 3 }
 0x377   : > { %s874_s13 = ssub.s32 32, %s1062_s23 }
 0x378   : > { %s875_s3 = sshll.u32 %s874_s13, 4 }
 0x379   : > { %876 = vsyncadd %s862_s24, %s875_s3  ;;  %p1865_p0 = scmp.ne.s32.totalorder %s1062_s23, 0  ;;  %s1073_s10 = sshll.u32 %s1603_s9, 5 }
 0x37a   : > { %s879_s26 = scalar_lea.hbm %s1927_s8, %s1073_s10  ;;  %s881_s15 = sshll.u32 %s1849_s27, 4  ;;  %s1874_s15 = int_to_ptr.vmem [resolvable:$true] %s881_s15 }
 0x37b   : > { %s883_s19 = sshll.u32 %s879_s26, 4  ;;  %s1066_s11 = sshll.u32 %s1972_s6, 7  ;;  %s1876_s19 = int_to_ptr.hbm [resolvable:$true] %s883_s19 }
 0x37c   : > { %s1426_s20 = sshra.s32 %s1874_s15, 4  ;;  %s1428_s18 = sshrl.u32 %s1066_s11, 4  ;;  %s1427_s20 = int_to_ptr.vmem [resolvable:$true] %s1426_s20 }
 0x37d   : > { %s1433_s16 = scalar_lea.vmem %s1427_s20, %s1428_s18  ;;  %s1534_s9 = smov [#allocation14]  }
 0x37e   : > { %p1434_p3 = scmp.ne.s32.totalorder %s1427_s20, %s1433_s16  ;;  %s1437_s14 = scalar_lea.vmem %s1534_s9, 64 }
 0x37f   : > { %p1439_p4 = scmp.lt.s32.totalorder %s1437_s14, %s1433_s16 }
 0x380   : > { %p1435_p8 = pnand %p1434_p3, %p1865_p0 }
 0x382   : > { %p1436_p9 = pneg %p1435_p8 }
 0x384   : > { %p1441_p11 = pnand %p1439_p4, %p1436_p9 }
 0x386   : > { %1444 = shalt.err (!%p1441_p11)
}
 0x387   : > { %s1445_s27 = sshra.s32 %s1876_s19, 4  ;;  %s1456_s3 = scalar_lea.hbm %s1927_s8, 56  ;;  %s1446_s27 = int_to_ptr.hbm [resolvable:$true] %s1445_s27 }
 0x388   : > { %s1452_s12 = scalar_lea.hbm %s1446_s27, %s1428_s18  ;;  %p1457_p2 = scmp.lt.s32.totalorder %s1446_s27, %s1927_s8 }
 0x389   : > { %p1453_p13 = scmp.ne.s32.totalorder %s1446_s27, %s1452_s12  ;;  %p1458_p7 = scmp.lt.s32.totalorder %s1456_s3, %s1452_s12 }
 0x38b   : > { %p1454_p5 = pnand %p1453_p13, %p1865_p0  ;;  %p1459_p10 = por %p1458_p7, %p1457_p2 }
 0x38d   : > { %p1455_p12 = pneg %p1454_p5 }
 0x38f   : > { %p1460_p6 = pnand %p1459_p10, %p1455_p12 }
 0x391   : > { %1463 = shalt.err (!%p1460_p6)
}
 0x392   : > { %s1535_s21 = smov 128   ;;  %s1536_s26 = smov 8  }
 0x393   : > { %889 = dma.vmem_to_hbm [thread:$0]  (%p1865_p0), %s1874_s15, %s1066_s11, %s1876_s19, %s862_s24, %s1535_s21, %s1535_s21, %s1536_s26  }
 0x394 PF: > { %s1958_s20 = sld [smem:[#allocation21_spill]]  ;;  %p1961_p3 = scmp.ge.s32.totalorder %s1519_s30, 2 }
 0x395   : > { %s1959_s18 = sld [smem:[#allocation24_spill]] }
 0x39a   : > { %s898_s16 = sand.u32 1, %s1958_s20  }
 0x39b   : > { %p1960_p1 = scmp.ne.s32.totalorder %s1959_s18, 0  ;;  %s899_s9 = scalar_lea.sflag [#allocation4], %s898_s16 }
 0x39d   : > { %p1130_p8 = pnand %p1961_p3, %p1960_p1 }
 0x39f   : > { %p1131_p9 = pneg %p1130_p8 }
 0x3a1   : > { %1502 = dma.done.wait (%p1131_p9), %s899_s9, 512  }
 0x3a2   : > { %1504 = vsyncadd (%p1131_p9), %s899_s9, 4294966784  ;;  %s1962_s30 = sld [smem:[#allocation22_spill]]  ;;  %s1964_s27 = smov %s1511_s28 }
 0x3a3   : > { %s1963_s17 = sld [smem:[#allocation23_spill]]  ;;  %s1965_s28 = smov %s1515_s29 }
 0x3a8   : > { %p26_p4 = scmp.ge.s32.totalorder %s1962_s30, 4  }
 0x3a9   : > { %s1966_s29 = smov %s1963_s17 }
 0x3aa   :  { %28 = sbr.rel (!%p26_p4) target bundleno = 12 (0xc), region = 130 }
 0x3af   :  { %905 = vsyncpa [#allocation3], 1 }
 0x3b0   :  { %907 = vsyncpa [#allocation3 + $0x1], 1 }
 0x3b1   :  { %908 = vsyncpa [#allocation6], 1 }
 0x3b2   :  { %910 = vsyncpa [#allocation6 + $0x1], 1 }
 0x3b3   :  { %911 = vsyncpa [#allocation9], 1 }
 0x3b4   :  { %912 = vsyncpa [#allocation12], 1 }
 0x3b5   :  { %913 = vsyncpa [#allocation4], 1 }
 0x3b6   :  { %915 = vsyncpa [#allocation4 + $0x1], 1 }

</bundles_post_ra>
